<compile_context>
chip_gen: v7x
topology: tpu7x:2x2x1
jax: 0.10.0
libtpu: 0.0.40
codegen_flags: <defaults>
</compile_context>

<pallas_src>
import functools

import jax
import jax.numpy as jnp
from jax import lax
from jax.experimental import pallas as pl
from jax.experimental.pallas import tpu as pltpu


def _round_up(x, m):
    return ((x + m - 1) // m) * m


def audio_embed_kernel(frames_ref, w_enc_ref, b_enc_ref,
                       w1_ref, b1_ref, w2_ref, b2_ref,
                       pooled_ref, proj_ref, acc_ref,
                       *, true_t, t_tile, mask_t):
    t = pl.program_id(1)

    @pl.when(t == 0)
    def _():
        acc_ref[...] = jnp.zeros_like(acc_ref)

    x = frames_ref[...]                                   # (bB, tT, F)
    if mask_t:
        # Last time tile extends past the true T; out-of-bounds reads are
        # undefined, so zero the tail before accumulating.
        time_idx = t * t_tile + lax.broadcasted_iota(jnp.int32, (1, t_tile, 1), 1)
        x = jnp.where(time_idx < true_t, x, 0)

    # Running sum over time frames, accumulated in f32 without materializing
    # an f32 copy of the tile (VPU reduce; f32 accumulator in VMEM scratch).
    acc_ref[...] += jnp.sum(x, axis=1, dtype=jnp.float32)

    @pl.when(t == pl.num_programs(1) - 1)
    def _():
        # 1/T is already folded into w_enc by the wrapper:
        #   pooled = mean_t(frames) @ W_enc + b_enc = sum_t(frames) @ (W/T) + b
        pooled = jnp.dot(acc_ref[...], w_enc_ref[...],
                         preferred_element_type=jnp.float32) + b_enc_ref[...]

        # projection = Linear(D, D) -> ReLU -> Linear(D, P)
        h1 = jnp.dot(pooled, w1_ref[...],
                     preferred_element_type=jnp.float32) + b1_ref[...]
        h1 = jnp.maximum(h1, 0.0)
        proj = jnp.dot(h1, w2_ref[...],
                       preferred_element_type=jnp.float32) + b2_ref[...]

        pooled_ref[...] = pooled.astype(pooled_ref.dtype)
        proj_ref[...] = proj.astype(proj_ref.dtype)


def audio_embedding_model(input_values, params, *, frame_size,
                          b_tile=128, t_tile=2048,
                          target_block_bytes=4 * 1024 * 1024):
    """input_values: (B, L) raw audio.  Returns (pooled (B, D), proj (B, P))."""
    B, L = input_values.shape
    F = frame_size
    T = L // F
    # glue: frame the waveform.  Contiguous slice + reshape -> no extra HBM
    # pass; trailing samples (L % F) are dropped, matching standard framing.
    frames = input_values[:, :T * F].reshape(B, T, F)

    w_enc = params["w_enc"].astype(jnp.float32)
    w1 = params["w1"].astype(jnp.float32)
    w2 = params["w2"].astype(jnp.float32)
    b_enc = params["b_enc"].astype(jnp.float32)
    b1 = params["b1"].astype(jnp.float32)
    b2 = params["b2"].astype(jnp.float32)
    D = w_enc.shape[1]
    P = w2.shape[1]

    # Fold the 1/T of the time-mean into the (linear) encoder weights — a tiny
    # weights-side op that keeps the in-kernel epilogue MXU-only.
    w_enc = w_enc * (1.0 / T)

    # Batch tile: full batch for small B (block == full dim, always legal);
    # otherwise a sublane-aligned tile so big batches feed the MXU with M>=128.
    bB = B if B <= b_tile else max(8, (b_tile // 8) * 8)

    # Time tile: aim for ~target_block_bytes per streamed frames block,
    # multiple of 8 (sublane), capped by t_tile and round_up(T, 8).
    itemsize = frames.dtype.itemsize
    tT = target_block_bytes // max(bB * F * itemsize, 1)
    tT = min(tT, t_tile, _round_up(T, 8))
    tT = max(8, (tT // 8) * 8)

    nb = pl.cdiv(B, bB)
    nt = pl.cdiv(T, tT)
    mask_t = (T % tT) != 0        # last time tile reads past T -> mask it

    # VMEM budget: double-buffered frames tile + (double-buffered) weights and
    # biases + outputs + f32 accumulator scratch, 2x headroom, 16 MiB floor,
    # capped at 75% of the chip's VMEM (~48 MiB v7x, ~96 MiB v5e/v6e).
    pad8 = lambda x: _round_up(max(x, 1), 8)
    est = (2 * bB * tT * F * itemsize                 # frames (double-buffered)
           + 2 * (F * D + D * D + D * P) * 4          # weights (double-buffered)
           + 2 * 3 * 8 * max(D, P) * 4                # biases (sublane-padded)
           + 2 * pad8(bB) * (D + P) * 4               # outputs
           + pad8(bB) * F * 4)                        # accumulator scratch
    try:
        vmem_cap = pltpu.get_tpu_info().vmem_capacity_bytes
    except Exception:
        vmem_cap = 64 * 1024 * 1024                   # conservative (v7x)
    vmem_limit = int(min(max(2 * est, 16 * 1024 * 1024), (3 * vmem_cap) // 4))

    kernel = functools.partial(audio_embed_kernel,
                               true_t=T, t_tile=tT, mask_t=mask_t)

    grid_spec = pltpu.PrefetchScalarGridSpec(
        num_scalar_prefetch=0,
        grid=(nb, nt),                                    # reduction axis last
        in_specs=[
            pl.BlockSpec((bB, tT, F), lambda b, t: (b, t, 0)),   # frames tile
            pl.BlockSpec((F, D), lambda b, t: (0, 0)),           # w_enc (/T)
            pl.BlockSpec((1, D), lambda b, t: (0, 0)),           # b_enc
            pl.BlockSpec((D, D), lambda b, t: (0, 0)),           # w1
            pl.BlockSpec((1, D), lambda b, t: (0, 0)),           # b1
            pl.BlockSpec((D, P), lambda b, t: (0, 0)),           # w2
            pl.BlockSpec((1, P), lambda b, t: (0, 0)),           # b2
        ],
        out_specs=(
            pl.BlockSpec((bB, D), lambda b, t: (b, 0)),          # pooled
            pl.BlockSpec((bB, P), lambda b, t: (b, 0)),          # projection
        ),
        scratch_shapes=[pltpu.VMEM((bB, F), jnp.float32)],       # frame-sum acc
    )

    pooled, proj = pl.pallas_call(
        kernel,
        out_shape=(jax.ShapeDtypeStruct((B, D), jnp.float32),
                   jax.ShapeDtypeStruct((B, P), jnp.float32)),
        grid_spec=grid_spec,
        compiler_params=pltpu.CompilerParams(
            dimension_semantics=("parallel", "arbitrary"),
            vmem_limit_bytes=vmem_limit),
    )(frames, w_enc, b_enc, w1, b1, w2, b2)
    return pooled, proj


def init_params(key, frame_size, embedding_dim, projection_dim):
    k0, k1, k2 = jax.random.split(key, 3)

    def lin(k, fan_in, fan_out):
        scale = 1.0 / jnp.sqrt(jnp.float32(fan_in))
        return jax.random.uniform(k, (fan_in, fan_out), jnp.float32,
                                  -scale, scale)

    return {
        "w_enc": lin(k0, frame_size, embedding_dim),
        "b_enc": jnp.zeros((1, embedding_dim), jnp.float32),
        "w1": lin(k1, embedding_dim, embedding_dim),
        "b1": jnp.zeros((1, embedding_dim), jnp.float32),
        "w2": lin(k2, embedding_dim, projection_dim),
        "b2": jnp.zeros((1, projection_dim), jnp.float32),
    }


if __name__ == "__main__":
    # small shapes consistent with the module (embedding_dim / projection_dim
    # scaled down from 768/256 to stay tiny but lane-aligned)
    B = 2
    FRAME = 128          # samples per frame (feature dim fed to encoder)
    T = 8                # time frames
    L = T * FRAME        # raw audio length
    D = 256              # embedding_dim
    P = 128              # projection_dim

    key = jax.random.PRNGKey(0)
    k_x, k_p = jax.random.split(key)
    input_values = jax.random.normal(k_x, (B, L), jnp.float32)
    params = init_params(k_p, FRAME, D, P)

    pooled, proj = audio_embedding_model(input_values, params,
                                         frame_size=FRAME)
    jax.block_until_ready((pooled, proj))

    # plain-JAX f32 reference (same framing / mean / MLP math as the kernel)
    frames = input_values[:, :T * FRAME].reshape(B, T, FRAME)
    mean_f = frames.mean(axis=1)
    pooled_ref = mean_f @ params["w_enc"] + params["b_enc"]
    h1_ref = jnp.maximum(pooled_ref @ params["w1"] + params["b1"], 0.0)
    proj_ref = h1_ref @ params["w2"] + params["b2"]

    assert pooled.shape == (B, D) and proj.shape == (B, P)
    assert jnp.allclose(pooled, pooled_ref, atol=2e-3, rtol=2e-3)
    assert jnp.allclose(proj, proj_ref, atol=2e-3, rtol=2e-3)

    print("KERNEL_OK")
</pallas_src>

<mosaic_0001>
module attributes {stable_mosaic.version = 11 : i64} {
  func.func @audio_embed_kernel(%arg0: i32, %arg1: i32, %arg2: memref<2x8x128xf32, #tpu.memory_space<vmem>>, %arg3: memref<128x256xf32, #tpu.memory_space<vmem>>, %arg4: memref<1x256xf32, #tpu.memory_space<vmem>>, %arg5: memref<256x256xf32, #tpu.memory_space<vmem>>, %arg6: memref<1x256xf32, #tpu.memory_space<vmem>>, %arg7: memref<256x128xf32, #tpu.memory_space<vmem>>, %arg8: memref<1x128xf32, #tpu.memory_space<vmem>>, %arg9: memref<2x256xf32, #tpu.memory_space<vmem>>, %arg10: memref<2x128xf32, #tpu.memory_space<vmem>>, %arg11: memref<2x128xf32, #tpu.memory_space<vmem>>) attributes {dimension_semantics = [#tpu.dimension_semantics<parallel>, #tpu.dimension_semantics<arbitrary>], iteration_bounds = array<i64: 1, 1>, scalar_prefetch = 0 : i64, scratch_operands = 1 : i64, tpu.core_type = #tpu.core_type<tc>, window_params = [{transform_indices = @transform_0, window_bounds = array<i64: 2, 8, 128>}, {pipeline_mode = #tpu.pipeline_mode<synchronous>, transform_indices = @transform_1, window_bounds = array<i64: 128, 256>}, {pipeline_mode = #tpu.pipeline_mode<synchronous>, transform_indices = @transform_2, window_bounds = array<i64: 1, 256>}, {pipeline_mode = #tpu.pipeline_mode<synchronous>, transform_indices = @transform_3, window_bounds = array<i64: 256, 256>}, {pipeline_mode = #tpu.pipeline_mode<synchronous>, transform_indices = @transform_4, window_bounds = array<i64: 1, 256>}, {pipeline_mode = #tpu.pipeline_mode<synchronous>, transform_indices = @transform_5, window_bounds = array<i64: 256, 128>}, {pipeline_mode = #tpu.pipeline_mode<synchronous>, transform_indices = @transform_6, window_bounds = array<i64: 1, 128>}, {transform_indices = @transform_7, window_bounds = array<i64: 2, 256>}, {transform_indices = @transform_8, window_bounds = array<i64: 2, 128>}]} {
    %c0_i32 = arith.constant 0 : i32
    %0 = arith.cmpi eq, %arg1, %c0_i32 : i32
    %1 = arith.extui %0 : i1 to i32
    %c0_i32_0 = arith.constant 0 : i32
    %2 = arith.cmpi ne, %1, %c0_i32_0 : i32
    scf.if %2 {
      %cst_9 = arith.constant 0.000000e+00 : f32
      %11 = vector.broadcast %cst_9 : f32 to vector<2x128xf32>
      %c0_10 = arith.constant 0 : index
      %c0_11 = arith.constant 0 : index
      %12 = vector.load %arg11[%c0_10, %c0_11] : memref<2x128xf32, #tpu.memory_space<vmem>>, vector<2x128xf32>
      tpu.vector_store %arg11[%c0_10, %c0_11], %11 {strides = array<i32>} : memref<2x128xf32, #tpu.memory_space<vmem>>, vector<2x128xf32>,
    } else {
    }
    %c0 = arith.constant 0 : index
    %c0_1 = arith.constant 0 : index
    %c0_2 = arith.constant 0 : index
    %3 = vector.load %arg2[%c0, %c0_1, %c0_2] : memref<2x8x128xf32, #tpu.memory_space<vmem>>, vector<2x8x128xf32>
    %c0_3 = arith.constant 0 : index
    %c0_4 = arith.constant 0 : index
    %4 = vector.load %arg11[%c0_3, %c0_4] : memref<2x128xf32, #tpu.memory_space<vmem>>, vector<2x128xf32>
    %cst = arith.constant dense<0.000000e+00> : vector<2x128xf32>
    %5 = vector.multi_reduction <add>, %3, %cst [1] : vector<2x8x128xf32> to vector<2x128xf32>
    %6 = arith.addf %4, %5 : vector<2x128xf32>
    %c0_5 = arith.constant 0 : index
    %c0_6 = arith.constant 0 : index
    %7 = vector.load %arg11[%c0_5, %c0_6] : memref<2x128xf32, #tpu.memory_space<vmem>>, vector<2x128xf32>
    tpu.vector_store %arg11[%c0_5, %c0_6], %6 {strides = array<i32>} : memref<2x128xf32, #tpu.memory_space<vmem>>, vector<2x128xf32>,
    %c0_i32_7 = arith.constant 0 : i32
    %8 = arith.cmpi eq, %arg1, %c0_i32_7 : i32
    %9 = arith.extui %8 : i1 to i32
    %c0_i32_8 = arith.constant 0 : i32
    %10 = arith.cmpi ne, %9, %c0_i32_8 : i32
    scf.if %10 {
      %c0_9 = arith.constant 0 : index
      %c0_10 = arith.constant 0 : index
      %11 = vector.load %arg11[%c0_9, %c0_10] : memref<2x128xf32, #tpu.memory_space<vmem>>, vector<2x128xf32>
      %c0_11 = arith.constant 0 : index
      %c0_12 = arith.constant 0 : index
      %12 = vector.load %arg3[%c0_11, %c0_12] : memref<128x256xf32, #tpu.memory_space<vmem>>, vector<128x256xf32>
      %cst_13 = arith.constant dense<0.000000e+00> : vector<2x256xf32>
      %13 = tpu.matmul %11, %12, %cst_13 {dimension_numbers = #tpu.dot_dimension_numbers<[1], [0], [0], [1], [0, 0, 1, 1], [], []>} : vector<2x128xf32>, vector<128x256xf32>, vector<2x256xf32> -> vector<2x256xf32>
      %c0_14 = arith.constant 0 : index
      %c0_15 = arith.constant 0 : index
      %14 = vector.load %arg4[%c0_14, %c0_15] : memref<1x256xf32, #tpu.memory_space<vmem>>, vector<1x256xf32>
      %15 = vector.broadcast %14 : vector<1x256xf32> to vector<2x256xf32>
      %16 = arith.addf %13, %15 : vector<2x256xf32>
      %c0_16 = arith.constant 0 : index
      %c0_17 = arith.constant 0 : index
      %17 = vector.load %arg5[%c0_16, %c0_17] : memref<256x256xf32, #tpu.memory_space<vmem>>, vector<256x256xf32>
      %cst_18 = arith.constant dense<0.000000e+00> : vector<2x256xf32>
      %18 = tpu.matmul %16, %17, %cst_18 {dimension_numbers = #tpu.dot_dimension_numbers<[1], [0], [0], [1], [0, 0, 1, 1], [], []>} : vector<2x256xf32>, vector<256x256xf32>, vector<2x256xf32> -> vector<2x256xf32>
      %c0_19 = arith.constant 0 : index
      %c0_20 = arith.constant 0 : index
      %19 = vector.load %arg6[%c0_19, %c0_20] : memref<1x256xf32, #tpu.memory_space<vmem>>, vector<1x256xf32>
      %20 = vector.broadcast %19 : vector<1x256xf32> to vector<2x256xf32>
      %21 = arith.addf %18, %20 : vector<2x256xf32>
      %cst_21 = arith.constant 0.000000e+00 : f32
      %22 = vector.broadcast %cst_21 : f32 to vector<2x256xf32>
      %23 = arith.maximumf %21, %22 : vector<2x256xf32>
      %c0_22 = arith.constant 0 : index
      %c0_23 = arith.constant 0 : index
      %24 = vector.load %arg7[%c0_22, %c0_23] : memref<256x128xf32, #tpu.memory_space<vmem>>, vector<256x128xf32>
      %cst_24 = arith.constant dense<0.000000e+00> : vector<2x128xf32>
      %25 = tpu.matmul %23, %24, %cst_24 {dimension_numbers = #tpu.dot_dimension_numbers<[1], [0], [0], [1], [0, 0, 1, 1], [], []>} : vector<2x256xf32>, vector<256x128xf32>, vector<2x128xf32> -> vector<2x128xf32>
      %c0_25 = arith.constant 0 : index
      %c0_26 = arith.constant 0 : index
      %26 = vector.load %arg8[%c0_25, %c0_26] : memref<1x128xf32, #tpu.memory_space<vmem>>, vector<1x128xf32>
      %27 = vector.broadcast %26 : vector<1x128xf32> to vector<2x128xf32>
      %28 = arith.addf %25, %27 : vector<2x128xf32>
      %c0_27 = arith.constant 0 : index
      %c0_28 = arith.constant 0 : index
      %29 = vector.load %arg9[%c0_27, %c0_28] : memref<2x256xf32, #tpu.memory_space<vmem>>, vector<2x256xf32>
      tpu.vector_store %arg9[%c0_27, %c0_28], %16 {strides = array<i32>} : memref<2x256xf32, #tpu.memory_space<vmem>>, vector<2x256xf32>,
      %c0_29 = arith.constant 0 : index
      %c0_30 = arith.constant 0 : index
      %30 = vector.load %arg10[%c0_29, %c0_30] : memref<2x128xf32, #tpu.memory_space<vmem>>, vector<2x128xf32>
      tpu.vector_store %arg10[%c0_29, %c0_30], %28 {strides = array<i32>} : memref<2x128xf32, #tpu.memory_space<vmem>>, vector<2x128xf32>,
    } else {
    }
    return
  }
  func.func @transform_0(%arg0: i32, %arg1: i32) -> (i32, i32, i32) {
    %c0_i32 = arith.constant 0 : i32
    %c0_i32_0 = arith.constant 0 : i32
    return %arg0, %arg1, %c0_i32 : i32, i32, i32
  }
  func.func @transform_1(%arg0: i32, %arg1: i32) -> (i32, i32) {
    %c0_i32 = arith.constant 0 : i32
    %c0_i32_0 = arith.constant 0 : i32
    %c0_i32_1 = arith.constant 0 : i32
    return %c0_i32, %c0_i32_0 : i32, i32
  }
  func.func @transform_2(%arg0: i32, %arg1: i32) -> (i32, i32) {
    %c0_i32 = arith.constant 0 : i32
    %c0_i32_0 = arith.constant 0 : i32
    %c0_i32_1 = arith.constant 0 : i32
    return %c0_i32, %c0_i32_0 : i32, i32
  }
  func.func @transform_3(%arg0: i32, %arg1: i32) -> (i32, i32) {
    %c0_i32 = arith.constant 0 : i32
    %c0_i32_0 = arith.constant 0 : i32
    %c0_i32_1 = arith.constant 0 : i32
    return %c0_i32, %c0_i32_0 : i32, i32
  }
  func.func @transform_4(%arg0: i32, %arg1: i32) -> (i32, i32) {
    %c0_i32 = arith.constant 0 : i32
    %c0_i32_0 = arith.constant 0 : i32
    %c0_i32_1 = arith.constant 0 : i32
    return %c0_i32, %c0_i32_0 : i32, i32
  }
  func.func @transform_5(%arg0: i32, %arg1: i32) -> (i32, i32) {
    %c0_i32 = arith.constant 0 : i32
    %c0_i32_0 = arith.constant 0 : i32
    %c0_i32_1 = arith.constant 0 : i32
    return %c0_i32, %c0_i32_0 : i32, i32
  }
  func.func @transform_6(%arg0: i32, %arg1: i32) -> (i32, i32) {
    %c0_i32 = arith.constant 0 : i32
    %c0_i32_0 = arith.constant 0 : i32
    %c0_i32_1 = arith.constant 0 : i32
    return %c0_i32, %c0_i32_0 : i32, i32
  }
  func.func @transform_7(%arg0: i32, %arg1: i32) -> (i32, i32) {
    %c0_i32 = arith.constant 0 : i32
    %c0_i32_0 = arith.constant 0 : i32
    return %arg0, %c0_i32 : i32, i32
  }
  func.func @transform_8(%arg0: i32, %arg1: i32) -> (i32, i32) {
    %c0_i32 = arith.constant 0 : i32
    %c0_i32_0 = arith.constant 0 : i32
    return %arg0, %c0_i32 : i32, i32
  }
}

</mosaic_0001>

<bundles_post_ra>
// kernel: tpu_custom_call.1
= control target key start
LH: loop header
LB: loop body
LE: loop exit
PB: predicated region body
PF: predicated region fallthrough
CT: control target
= control target key end

     0   :  { %14 = vsyncpa [#allocation4], 0  ;;  %s1007_s0 = inlined_call_operand.hbm [shape: f32[2,8,128], index: 0, kind: input, shape index: {}]   ;;  %s1008_s1 = inlined_call_operand.hbm [shape: f32[128,256], index: 1, kind: input, shape index: {}]   ;;  %s1009_s2 = inlined_call_operand.vmem [shape: f32[1,256], index: 2, kind: input, shape index: {}]   ;;  %s1010_s3 = inlined_call_operand.hbm [shape: f32[256,256], index: 3, kind: input, shape index: {}]   ;;  %s1011_s4 = inlined_call_operand.vmem [shape: f32[1,256], index: 4, kind: input, shape index: {}]   ;;  %s1012_s5 = inlined_call_operand.hbm [shape: f32[256,128], index: 5, kind: input, shape index: {}]   ;;  %s1013_s6 = inlined_call_operand.vmem [shape: f32[1,128], index: 6, kind: input, shape index: {}]   ;;  %s1014_s7 = inlined_call_operand.hbm [shape: f32[2,256], index: 7, kind: output, shape index: {0}]   ;;  %s1015_s8 = inlined_call_operand.hbm [shape: f32[2,128], index: 8, kind: output, shape index: {1}]  }
   0x1   :  { %15 = vsyncpa [#allocation7], 0 }
   0x2   :  { %16 = vsyncpa [#allocation10], 0 }
   0x3   :  { %17 = vsyncpa [#allocation5], 0 }
   0x4   :  { %18 = vsyncpa [#allocation13], 0  ;;  %s851_s27 = smov [#allocation6]   ;;  %s709_s9 = scalar_lea.hbm %s1008_s1, 4096 }
   0x5   :  { %s36_s28 = sshll.u32 %s851_s27, 4  ;;  %p710_p0 = scmp.ne.s32.totalorder %s1008_s1, %s709_s9  ;;  %s37_s28 = int_to_ptr.vmem [resolvable:$true] %s36_s28 }
   0x6   :  { %p713_p1 = scmp.lt.u32.totalorder %s709_s9, %s1008_s1 }
   0x8   :  { %p715_p2 = pnand %p713_p1, %p710_p0 }
   0xa   :  { %718 = shalt.err (!%p715_p2)
}
   0xb   :  { %s719_s14 = scalar_lea.vmem %s37_s28, 4096  ;;  %p724_p4 = scmp.lt.s32.totalorder %s37_s28, %s37_s28 }
   0xc   :  { %p720_p3 = scmp.ne.s32.totalorder %s37_s28, %s719_s14  ;;  %p725_p5 = scmp.lt.s32.totalorder %s719_s14, %s719_s14 }
   0xe   :  { %p726_p6 = por %p725_p5, %p724_p4 }
  0x10   :  { %p727_p7 = pnand %p726_p6, %p720_p3 }
  0x12   :  { %730 = shalt.err (!%p727_p7)
}
  0x13   :  { %s852_s15 = smov 256   ;;  %s853_s16 = smov 16  }
  0x14   :  { %42 = dma.hbm_to_vmem [thread:$0]  %s1008_s1, 4096, %s37_s28, [#allocation7], %s852_s15, %s852_s15, %s853_s16  }
  0x15   :  { %s854_s19 = smov [#allocation3]   ;;  %s731_s23 = scalar_lea.hbm %s1007_s0, 256 }
  0x16   :  { %s24_s20 = sshll.u32 %s854_s19, 4  ;;  %p732_p8 = scmp.ne.s32.totalorder %s1007_s0, %s731_s23  ;;  %s25_s20 = int_to_ptr.vmem [resolvable:$true] %s24_s20 }
  0x17   :  { %p735_p9 = scmp.lt.u32.totalorder %s731_s23, %s1007_s0 }
  0x19   :  { %p737_p10 = pnand %p735_p9, %p732_p8 }
  0x1b   :  { %740 = shalt.err (!%p737_p10)
}
  0x1c   :  { %s741_s29 = scalar_lea.vmem %s25_s20, 256  ;;  %p746_p12 = scmp.lt.s32.totalorder %s25_s20, %s25_s20 }
  0x1d   :  { %p742_p11 = scmp.ne.s32.totalorder %s25_s20, %s741_s29  ;;  %p747_p13 = scmp.lt.s32.totalorder %s741_s29, %s741_s29 }
  0x1f   :  { %p748_p0 = por %p747_p13, %p746_p12 }
  0x21   :  { %p749_p1 = pnand %p748_p0, %p742_p11 }
  0x23   :  { %752 = shalt.err (!%p749_p1)
}
  0x24   :  { %s855_s1 = smov 128   ;;  %s856_s28 = smov 8  }
  0x25   :  { %30 = dma.hbm_to_vmem [thread:$0]  %s1007_s0, 256, %s25_s20, [#allocation4], %s855_s1, %s855_s1, %s856_s28  }
  0x26   :  { %s857_s10 = smov [#allocation8]   ;;  %s858_s12 = smov [#allocation9]  }
  0x27   :  { %s50_s11 = sshll.u32 %s857_s10, 4  ;;  %s64_s13 = sshll.u32 %s858_s12, 4  ;;  %s51_s11 = int_to_ptr.vmem [resolvable:$true] %s50_s11  ;;  %s937_s13 = int_to_ptr.vmem [resolvable:$true] %s64_s13 }
  0x28   :  { %s753_s18 = scalar_lea.hbm %s1010_s3, 8192 }
  0x29   :  { %p754_p2 = scmp.ne.s32.totalorder %s1010_s3, %s753_s18  ;;  %p757_p3 = scmp.lt.u32.totalorder %s753_s18, %s1010_s3 }
  0x2b   :  { %p759_p4 = pnand %p757_p3, %p754_p2 }
  0x2d   :  { %762 = shalt.err (!%p759_p4)
}
  0x2e   :  { %s763_s0 = scalar_lea.vmem %s51_s11, 8192  ;;  %p768_p6 = scmp.lt.s32.totalorder %s51_s11, %s51_s11 }
  0x2f   :  { %p764_p5 = scmp.ne.s32.totalorder %s51_s11, %s763_s0  ;;  %p769_p7 = scmp.lt.s32.totalorder %s763_s0, %s763_s0 }
  0x31   :  { %p770_p8 = por %p769_p7, %p768_p6 }
  0x33   :  { %p771_p9 = pnand %p770_p8, %p764_p5 }
  0x35   :  { %774 = shalt.err (!%p771_p9)
}
  0x36   :  { %56 = dma.hbm_to_vmem [thread:$0]  %s1010_s3, 8192, %s51_s11, [#allocation7], %s852_s15, %s852_s15, %s853_s16  }
  0x37   :  { %s775_s27 = scalar_lea.hbm %s1012_s5, 4096 }
  0x38   :  { %p776_p10 = scmp.ne.s32.totalorder %s1012_s5, %s775_s27  ;;  %p779_p11 = scmp.lt.u32.totalorder %s775_s27, %s1012_s5 }
  0x3a   :  { %p781_p12 = pnand %p779_p11, %p776_p10 }
  0x3c   :  { %784 = shalt.err (!%p781_p12)
}
  0x3d   :  { %s785_s12 = scalar_lea.vmem %s937_s13, 4096  ;;  %p790_p0 = scmp.lt.s32.totalorder %s937_s13, %s937_s13 }
  0x3e   :  { %p786_p13 = scmp.ne.s32.totalorder %s937_s13, %s785_s12  ;;  %p791_p1 = scmp.lt.s32.totalorder %s785_s12, %s785_s12 }
  0x40   :  { %p792_p2 = por %p791_p1, %p790_p0 }
  0x42   :  { %p793_p3 = pnand %p792_p2, %p786_p13 }
  0x44   :  { %796 = shalt.err (!%p793_p3)
}
  0x45   :  { %70 = dma.hbm_to_vmem [thread:$0]  %s1012_s5, 4096, %s937_s13, [#allocation10], %s855_s1, %s855_s1, %s856_s28  }
  0x46   :  { %841 = dma.done.wait [#allocation4], 256  }
  0x47   :  { %842 = vsyncadd [#allocation4], 4294967040 }
  0x48   :  { %843 = dma.done.wait [#allocation7], 12288  }
  0x49   :  { %844 = vsyncadd [#allocation7], 4294955008 }
  0x4a   :  { %845 = dma.done.wait [#allocation10], 4096  }
  0x4b   :  { %846 = vsyncadd [#allocation10], 4294963200  ;;  %v859_v0 = vmov 0.0   ;;  %v117_v1 = vld [vmem:[#allocation6 + $0x8] sm:$0xff]  ;;  %v119_v2 = vld [vmem:[#allocation6 + $0x18] sm:$0xff]  ;;  %vm107_vm0 = vcmask 1041409  }
  0x4c   :  { %89 = vst [vmem:[#allocation2] sm:$0x3] %v859_v0  ;;  %224 = vmatprep.mubr.f32.mxu0 %v859_v0  ;;  %v116_v3 = vld [vmem:[#allocation6] sm:$0xff]  ;;  %v570_v4 = vpack.c.bf16 %v119_v2, %v117_v1  ;;  %v118_v5 = vld [vmem:[#allocation6 + $0x10] sm:$0xff]  ;;  %v121_v6 = vld [vmem:[#allocation6 + $0x28] sm:$0xff]  ;;  %s860_s28 = smov [#allocation11]  }
  0x4d   :  { %v123_v7 = vld [vmem:[#allocation6 + $0x38] sm:$0xff]  ;;  %v572_v8 = vpack.c.bf16 %v118_v5, %v116_v3  ;;  %v120_v10 = vld [vmem:[#allocation6 + $0x20] sm:$0xff]  ;;  %v122_v11 = vld [vmem:[#allocation6 + $0x30] sm:$0xff]  ;;  %s508_s11 = sshll.u32 %s860_s28, 4  ;;  %s509_s11 = int_to_ptr.vmem [resolvable:$true] %s508_s11 }
  0x4e   :  { %v574_v9 = vpack.c.bf16 %v123_v7, %v121_v6  ;;  %v125_v12 = vld [vmem:[#allocation6 + $0x48] sm:$0xff]  ;;  %571 = vmatprep.subr.bf16.mxu0 %v570_v4  ;;  %v127_v13 = vld [vmem:[#allocation6 + $0x58] sm:$0xff]  ;;  %v576_v14 = vpack.c.bf16 %v122_v11, %v120_v10  ;;  %v124_v16 = vld [vmem:[#allocation6 + $0x40] sm:$0xff]  ;;  %s797_s13 = scalar_lea.vmem %s509_s11, 64  ;;  %p802_p5 = scmp.lt.s32.totalorder %s509_s11, %s509_s11 }
  0x4f   :  { %573 = vmatpush1.bf16.msra.mxu0 %v572_v8  ;;  %v578_v15 = vpack.c.bf16 %v127_v13, %v125_v12  ;;  %v126_v17 = vld [vmem:[#allocation6 + $0x50] sm:$0xff]  ;;  %v129_v18 = vld [vmem:[#allocation6 + $0x68] sm:$0xff]  ;;  %v131_v19 = vld [vmem:[#allocation6 + $0x78] sm:$0xff]  ;;  %p798_p4 = scmp.ne.s32.totalorder %s509_s11, %s797_s13  ;;  %p803_p6 = scmp.lt.s32.totalorder %s797_s13, %s797_s13 }
  0x50   :  { %575 = vmatprep.subr.bf16.mxu0 %v574_v9  ;;  %v580_v20 = vpack.c.bf16 %v126_v17, %v124_v16  ;;  %v582_v21 = vpack.c.bf16 %v131_v19, %v129_v18  ;;  %v128_v22 = vld [vmem:[#allocation6 + $0x60] sm:$0xff]  ;;  %v130_v23 = vld [vmem:[#allocation6 + $0x70] sm:$0xff]  ;;  %v133_v24 = vld [vmem:[#allocation6 + $0x88] sm:$0xff] }
  0x51   :  { %v135_v25 = vld [vmem:[#allocation6 + $0x98] sm:$0xff]  ;;  %v90_v26 = vld [vmem:[#allocation3] sm:$0xff]  ;;  %v132_v27 = vld [vmem:[#allocation6 + $0x80] sm:$0xff]  ;;  %v584_v32 = vpack.c.bf16 %v130_v23, %v128_v22  ;;  %p804_p7 = por %p803_p6, %p802_p5 }
  0x52   :  { %v134_v28 = vld [vmem:[#allocation6 + $0x90] sm:$0xff]  ;;  %v91_v29 = vld [vmem:[#allocation3 + $0x8] sm:$0xff]  ;;  %v93_v30 = vrot.slane %v90_v26, 4  ;;  %v232_v31 = vld [vmem:[#allocation8 + $0x8] sm:$0xff]  ;;  %v586_v39 = vpack.c.bf16 %v135_v25, %v133_v24 }
  0x53   :  { %577 = vmatpush1.bf16.msra.mxu0 %v576_v14  ;;  %v137_v33 = vld [vmem:[#allocation6 + $0xa8] sm:$0xff]  ;;  %v139_v34 = vld [vmem:[#allocation6 + $0xb8] sm:$0xff]  ;;  %v99_v35 = vrot.slane %v91_v29, 4  ;;  %v231_v37 = vld [vmem:[#allocation8] sm:$0xff]  ;;  %v588_v52 = vpack.c.bf16 %v134_v28, %v132_v27  ;;  %p805_p8 = pnand %p804_p7, %p798_p4 }
  0x54   :  { %579 = vmatprep.subr.bf16.mxu0 %v578_v15  ;;  %v234_v36 = vld [vmem:[#allocation8 + $0x18] sm:$0xff]  ;;  %v233_v38 = vld [vmem:[#allocation8 + $0x10] sm:$0xff]  ;;  %v94_v40 = vadd.f32 %v93_v30, %v90_v26  ;;  %v236_v43 = vld [vmem:[#allocation8 + $0x28] sm:$0xff]  ;;  %v590_v57 = vpack.c.bf16 %v139_v34, %v137_v33 }
  0x55   :  { %v602_v41 = vpack.c.bf16 %v234_v36, %v232_v31  ;;  %v604_v42 = vpack.c.bf16 %v233_v38, %v231_v37  ;;  %v238_v44 = vld [vmem:[#allocation8 + $0x38] sm:$0xff]  ;;  %v235_v45 = vld [vmem:[#allocation8 + $0x20] sm:$0xff]  ;;  %v100_v46 = vadd.f32 %v99_v35, %v91_v29  ;;  %v237_v48 = vld [vmem:[#allocation8 + $0x30] sm:$0xff] }
  0x56   :  { %v606_v47 = vpack.c.bf16 %v238_v44, %v236_v43  ;;  %v240_v49 = vld [vmem:[#allocation8 + $0x48] sm:$0xff]  ;;  %v242_v50 = vld [vmem:[#allocation8 + $0x58] sm:$0xff]  ;;  %v95_v51 = vrot.slane %v94_v40, 2  ;;  %v136_v53 = vld [vmem:[#allocation6 + $0xa0] sm:$0xff]  ;;  %v608_v56 = vpack.c.bf16 %v237_v48, %v235_v45 }
  0x57   :  { %581 = vmatpush1.bf16.msra.mxu0 %v580_v20  ;;  %603 = vmatprep.subr.bf16.mxu1 %v602_v41  ;;  %v138_v54 = vld [vmem:[#allocation6 + $0xb0] sm:$0xff]  ;;  %v101_v55 = vrot.slane %v100_v46, 2  ;;  %v141_v58 = vld [vmem:[#allocation6 + $0xc8] sm:$0xff]  ;;  %v610_v60 = vpack.c.bf16 %v242_v50, %v240_v49  ;;  %v239_v61 = vld [vmem:[#allocation8 + $0x40] sm:$0xff] }
  0x58   :  { %583 = vmatprep.subr.bf16.mxu0 %v582_v21  ;;  %605 = vmatpush1.bf16.msra.mxu1 %v604_v42  ;;  %v96_v59 = vadd.f32 %v95_v51, %v94_v40  ;;  %v241_v62 = vld [vmem:[#allocation8 + $0x50] sm:$0xff]  ;;  %v143_v63 = vld [vmem:[#allocation6 + $0xd8] sm:$0xff]  ;;  %v244_v1 = vld [vmem:[#allocation8 + $0x68] sm:$0xff]  ;;  %v592_v4 = vpack.c.bf16 %v138_v54, %v136_v53 }
  0x59   :  { %607 = vmatprep.subr.bf16.mxu1 %v606_v47  ;;  %v102_v0 = vadd.f32 %v101_v55, %v100_v46  ;;  %v246_v2 = vld [vmem:[#allocation8 + $0x78] sm:$0xff]  ;;  %v140_v5 = vld [vmem:[#allocation6 + $0xc0] sm:$0xff]  ;;  %v142_v6 = vld [vmem:[#allocation6 + $0xd0] sm:$0xff]  ;;  %v612_v9 = vpack.c.bf16 %v241_v62, %v239_v61  ;;  %v594_v10 = vpack.c.bf16 %v143_v63, %v141_v58 }
  0x5a   :  { %v97_v3 = vrot.slane %v96_v59, 1  ;;  %v145_v7 = vld [vmem:[#allocation6 + $0xe8] sm:$0xff]  ;;  %v147_v11 = vld [vmem:[#allocation6 + $0xf8] sm:$0xff]  ;;  %v614_v13 = vpack.c.bf16 %v246_v2, %v244_v1  ;;  %v243_v14 = vld [vmem:[#allocation8 + $0x60] sm:$0xff]  ;;  %v596_v20 = vpack.c.bf16 %v142_v6, %v140_v5 }
  0x5b   :  { %585 = vmatpush1.bf16.msra.mxu0 %v584_v32  ;;  %v103_v8 = vrot.slane %v102_v0, 1  ;;  %v245_v15 = vld [vmem:[#allocation8 + $0x70] sm:$0xff]  ;;  %v92_v16 = vld [vmem:[#allocation2] sm:$0x3]  ;;  %v250_v19 = vld [vmem:[#allocation8 + $0x98] sm:$0xff]  ;;  %v598_v24 = vpack.c.bf16 %v147_v11, %v145_v7 }
  0x5c   :  { %587 = vmatprep.subr.bf16.mxu0 %v586_v39  ;;  %609 = vmatpush1.bf16.msra.mxu1 %v608_v56  ;;  %v98_v12 = vadd.f32 %v97_v3, %v96_v59  ;;  %v248_v18 = vld [vmem:[#allocation8 + $0x88] sm:$0xff]  ;;  %v144_v21 = vld [vmem:[#allocation6 + $0xe0] sm:$0xff]  ;;  %v616_v23 = vpack.c.bf16 %v245_v15, %v243_v14  ;;  %v146_v25 = vld [vmem:[#allocation6 + $0xf0] sm:$0xff] }
  0x5d   :  { %611 = vmatprep.subr.bf16.mxu1 %v610_v60  ;;  %v104_v17 = vadd.f32 %v103_v8, %v102_v0  ;;  %v618_v27 = vpack.c.bf16 %v250_v19, %v248_v18  ;;  %v247_v28 = vld [vmem:[#allocation8 + $0x80] sm:$0xff]  ;;  %v249_v29 = vld [vmem:[#allocation8 + $0x90] sm:$0xff]  ;;  %v252_v30 = vld [vmem:[#allocation8 + $0xa8] sm:$0xff]  ;;  %v600_v32 = vpack.c.bf16 %v146_v25, %v144_v21 }
  0x5e   :  { %v254_v31 = vld [vmem:[#allocation8 + $0xb8] sm:$0xff]  ;;  %v620_v33 = vpack.c.bf16 %v249_v29, %v247_v28  ;;  %v251_v35 = vld [vmem:[#allocation8 + $0xa0] sm:$0xff]  ;;  %v253_v36 = vld [vmem:[#allocation8 + $0xb0] sm:$0xff] }
  0x5f   :  { %589 = vmatpush1.bf16.msra.mxu0 %v588_v52  ;;  %v108_v22 = vsel %vm107_vm0, %v104_v17, %v98_v12  ;;  %v622_v34 = vpack.c.bf16 %v254_v31, %v252_v30  ;;  %v256_v37 = vld [vmem:[#allocation8 + $0xc8] sm:$0xff]  ;;  %v258_v38 = vld [vmem:[#allocation8 + $0xd8] sm:$0xff]  ;;  %v624_v39 = vpack.c.bf16 %v253_v36, %v251_v35  ;;  %v255_v41 = vld [vmem:[#allocation8 + $0xc0] sm:$0xff] }
  0x60   :  { %591 = vmatprep.subr.bf16.mxu0 %v590_v57  ;;  %613 = vmatpush1.bf16.msra.mxu1 %v612_v9  ;;  %v110_v26 = vadd.f32 %v108_v22, %v92_v16  ;;  %v626_v40 = vpack.c.bf16 %v258_v38, %v256_v37  ;;  %v257_v42 = vld [vmem:[#allocation8 + $0xd0] sm:$0xff]  ;;  %v260_v44 = vld [vmem:[#allocation8 + $0xe8] sm:$0xff]  ;;  %v262_v45 = vld [vmem:[#allocation8 + $0xf8] sm:$0xff] }
  0x61   :  { %615 = vmatprep.subr.bf16.mxu1 %v614_v13  ;;  %v628_v46 = vpack.c.bf16 %v257_v42, %v255_v41  ;;  %v630_v47 = vpack.c.bf16 %v262_v45, %v260_v44  ;;  %v259_v48 = vld [vmem:[#allocation8 + $0xe0] sm:$0xff]  ;;  %v261_v49 = vld [vmem:[#allocation8 + $0xf0] sm:$0xff]  ;;  %v264_v50 = vld [vmem:[#allocation8 + $0x108] sm:$0xff] }
  0x62   :  { %111 = vst [vmem:[#allocation2] sm:$0x3] %v110_v26  ;;  %v266_v51 = vld [vmem:[#allocation8 + $0x118] sm:$0xff]  ;;  %v632_v52 = vpack.c.bf16 %v261_v49, %v259_v48  ;;  %v263_v54 = vld [vmem:[#allocation8 + $0x100] sm:$0xff]  ;;  %v265_v55 = vld [vmem:[#allocation8 + $0x110] sm:$0xff] }
  0x63   :  { %593 = vmatpush1.bf16.msra.mxu0 %v592_v4  ;;  %v634_v53 = vpack.c.bf16 %v266_v51, %v264_v50  ;;  %v268_v56 = vld [vmem:[#allocation8 + $0x128] sm:$0xff]  ;;  %v270_v57 = vld [vmem:[#allocation8 + $0x138] sm:$0xff]  ;;  %v636_v58 = vpack.c.bf16 %v265_v55, %v263_v54  ;;  %v267_v60 = vld [vmem:[#allocation8 + $0x120] sm:$0xff] }
  0x64   :  { %595 = vmatprep.subr.bf16.mxu0 %v594_v10  ;;  %617 = vmatpush1.bf16.msra.mxu1 %v616_v23  ;;  %v638_v59 = vpack.c.bf16 %v270_v57, %v268_v56  ;;  %v269_v61 = vld [vmem:[#allocation8 + $0x130] sm:$0xff]  ;;  %v272_v62 = vld [vmem:[#allocation8 + $0x148] sm:$0xff]  ;;  %v274_v63 = vld [vmem:[#allocation8 + $0x158] sm:$0xff] }
  0x65   :  { %619 = vmatprep.subr.bf16.mxu1 %v618_v27  ;;  %v640_v0 = vpack.c.bf16 %v269_v61, %v267_v60  ;;  %v642_v1 = vpack.c.bf16 %v274_v63, %v272_v62  ;;  %v271_v2 = vld [vmem:[#allocation8 + $0x140] sm:$0xff]  ;;  %v273_v3 = vld [vmem:[#allocation8 + $0x150] sm:$0xff]  ;;  %v276_v4 = vld [vmem:[#allocation8 + $0x168] sm:$0xff] }
  0x66   :  { %v278_v5 = vld [vmem:[#allocation8 + $0x178] sm:$0xff]  ;;  %v644_v6 = vpack.c.bf16 %v273_v3, %v271_v2  ;;  %v275_v8 = vld [vmem:[#allocation8 + $0x160] sm:$0xff]  ;;  %v277_v9 = vld [vmem:[#allocation8 + $0x170] sm:$0xff] }
  0x67   :  { %597 = vmatpush1.bf16.msra.mxu0 %v596_v20  ;;  %v646_v7 = vpack.c.bf16 %v278_v5, %v276_v4  ;;  %v280_v10 = vld [vmem:[#allocation8 + $0x188] sm:$0xff]  ;;  %v282_v11 = vld [vmem:[#allocation8 + $0x198] sm:$0xff]  ;;  %v648_v12 = vpack.c.bf16 %v277_v9, %v275_v8  ;;  %v279_v14 = vld [vmem:[#allocation8 + $0x180] sm:$0xff] }
  0x68   :  { %599 = vmatprep.subr.bf16.mxu0 %v598_v24  ;;  %621 = vmatpush1.bf16.msra.mxu1 %v620_v33  ;;  %v650_v13 = vpack.c.bf16 %v282_v11, %v280_v10  ;;  %v281_v15 = vld [vmem:[#allocation8 + $0x190] sm:$0xff]  ;;  %v284_v16 = vld [vmem:[#allocation8 + $0x1a8] sm:$0xff]  ;;  %v286_v17 = vld [vmem:[#allocation8 + $0x1b8] sm:$0xff]  ;;  %v150_v10 = vlaneseq }
  0x69   :  { %623 = vmatprep.subr.bf16.mxu1 %v622_v34  ;;  %v115_v43 = vld [vmem:[#allocation2] sm:$0x3]  ;;  %v652_v18 = vpack.c.bf16 %v281_v15, %v279_v14  ;;  %v654_v19 = vpack.c.bf16 %v286_v17, %v284_v16  ;;  %v283_v20 = vld [vmem:[#allocation8 + $0x1a0] sm:$0xff]  ;;  %v285_v21 = vld [vmem:[#allocation8 + $0x1b0] sm:$0xff] }
  0x6a   :  { %v288_v22 = vld [vmem:[#allocation8 + $0x1c8] sm:$0xff]  ;;  %v290_v23 = vld [vmem:[#allocation8 + $0x1d8] sm:$0xff]  ;;  %v656_v24 = vpack.c.bf16 %v285_v21, %v283_v20  ;;  %v287_v26 = vld [vmem:[#allocation8 + $0x1c0] sm:$0xff]  ;;  %v151_v11 = vshrl.u32 %v150_v10, 7 }
  0x6b   :  { %601 = vmatpush1.bf16.msra.mxu0 %v600_v32  ;;  %v658_v25 = vpack.c.bf16 %v290_v23, %v288_v22  ;;  %v289_v27 = vld [vmem:[#allocation8 + $0x1d0] sm:$0xff]  ;;  %v292_v29 = vld [vmem:[#allocation8 + $0x1e8] sm:$0xff]  ;;  %v294_v30 = vld [vmem:[#allocation8 + $0x1f8] sm:$0xff] }
  0x6c   :  { %625 = vmatpush1.bf16.msra.mxu1 %v624_v39  ;;  %v660_v28 = vpack.c.bf16 %v289_v27, %v287_v26  ;;  %v662_v31 = vpack.c.bf16 %v294_v30, %v292_v29  ;;  %v291_v32 = vld [vmem:[#allocation8 + $0x1e0] sm:$0xff]  ;;  %v293_v33 = vld [vmem:[#allocation8 + $0x1f0] sm:$0xff]  ;;  %v397_v36 = vld [vmem:[#allocation9 + $0x88] sm:$0xff]  ;;  %v156_v14 = vsub.s32 1, %v151_v11 }
  0x6d   :  { %627 = vmatprep.subr.bf16.mxu1 %v626_v40  ;;  %v664_v34 = vpack.c.bf16 %v293_v33, %v291_v32  ;;  %v396_v35 = vld [vmem:[#allocation9 + $0x80] sm:$0xff]  ;;  %v381_v39 = vld [vmem:[#allocation9 + $0x8] sm:$0xff]  ;;  %v398_v40 = vld [vmem:[#allocation9 + $0x90] sm:$0xff] }
  0x6e   :  { %225 = vmatmul.mubr.f32.vlgmr.msra.gmra.mrb[0].mxu0 %v115_v43  ;;  %v380_v37 = vld [vmem:[#allocation9] sm:$0xff]  ;;  %v666_v38 = vpack.c.bf16 %v397_v36, %v396_v35  ;;  %v399_v41 = vld [vmem:[#allocation9 + $0x98] sm:$0xff]  ;;  %v382_v44 = vld [vmem:[#allocation9 + $0x10] sm:$0xff] }
  0x6f   :  { %v668_v42 = vpack.c.bf16 %v381_v39, %v380_v37  ;;  %v670_v43 = vpack.c.bf16 %v399_v41, %v398_v40  ;;  %v383_v45 = vld [vmem:[#allocation9 + $0x18] sm:$0xff]  ;;  %v384_v50 = vld [vmem:[#allocation9 + $0x20] sm:$0xff]  ;;  %v385_v51 = vld [vmem:[#allocation9 + $0x28] sm:$0xff] }
  0x70   :  { %629 = vmatpush1.bf16.msra.mxu1 %v628_v46  ;;  %v400_v46 = vld [vmem:[#allocation9 + $0xa0] sm:$0xff]  ;;  %667 = vmatprep.subr.bf16.mxu0 %v666_v38  ;;  %v672_v48 = vpack.c.bf16 %v383_v45, %v382_v44  ;;  %v676_v54 = vpack.c.bf16 %v385_v51, %v384_v50  ;;  %v386_v56 = vld [vmem:[#allocation9 + $0x30] sm:$0xff]  ;;  %v387_v57 = vld [vmem:[#allocation9 + $0x38] sm:$0xff] }
  0x71   :  { %631 = vmatprep.subr.bf16.mxu1 %v630_v47  ;;  %v401_v47 = vld [vmem:[#allocation9 + $0xa8] sm:$0xff]  ;;  %669 = vmatpush3.bf16.msra.mxu0 %v668_v42  ;;  %v680_v60 = vpack.c.bf16 %v387_v57, %v386_v56  ;;  %v388_v62 = vld [vmem:[#allocation9 + $0x40] sm:$0xff]  ;;  %v390_v4 = vld [vmem:[#allocation9 + $0x50] sm:$0xff] }
  0x72   :  { %671 = vmatprep.subr.bf16.mxu0 %v670_v43  ;;  %v674_v49 = vpack.c.bf16 %v401_v47, %v400_v46  ;;  %v389_v63 = vld [vmem:[#allocation9 + $0x48] sm:$0xff]  ;;  %v391_v5 = vld [vmem:[#allocation9 + $0x58] sm:$0xff]  ;;  %v392_v22 = vld [vmem:[#allocation9 + $0x60] sm:$0xff] }
  0x73   :  { %v684_v2 = vpack.c.bf16 %v389_v63, %v388_v62  ;;  %v688_v8 = vpack.c.bf16 %v391_v5, %v390_v4  ;;  %v393_v23 = vld [vmem:[#allocation9 + $0x68] sm:$0xff]  ;;  %v411_v26 = vld [vmem:[#allocation9 + $0xf8] sm:$0xff] }
  0x74   :  { %633 = vmatpush1.bf16.msra.mxu1 %v632_v52  ;;  %v402_v52 = vld [vmem:[#allocation9 + $0xb0] sm:$0xff]  ;;  %v395_v29 = vld [vmem:[#allocation9 + $0x78] sm:$0xff] }
  0x75   :  { %635 = vmatprep.subr.bf16.mxu1 %v634_v53  ;;  %v403_v53 = vld [vmem:[#allocation9 + $0xb8] sm:$0xff]  ;;  %673 = vmatpush3.bf16.msra.mxu0 %v672_v48 }
  0x76   :  { %675 = vmatprep.subr.bf16.mxu0 %v674_v49  ;;  %v678_v55 = vpack.c.bf16 %v403_v53, %v402_v52 }
  0x78   :  { %637 = vmatpush1.bf16.msra.mxu1 %v636_v58  ;;  %v404_v58 = vld [vmem:[#allocation9 + $0xc0] sm:$0xff] }
  0x79   :  { %639 = vmatprep.subr.bf16.mxu1 %v638_v59  ;;  %v405_v59 = vld [vmem:[#allocation9 + $0xc8] sm:$0xff]  ;;  %677 = vmatpush3.bf16.msra.mxu0 %v676_v54 }
  0x7a   :  { %679 = vmatprep.subr.bf16.mxu0 %v678_v55  ;;  %v682_v61 = vpack.c.bf16 %v405_v59, %v404_v58 }
  0x7c   :  { %641 = vmatpush1.bf16.msra.mxu1 %v640_v0  ;;  %v406_v0 = vld [vmem:[#allocation9 + $0xd0] sm:$0xff] }
  0x7d   :  { %643 = vmatprep.subr.bf16.mxu1 %v642_v1  ;;  %v407_v1 = vld [vmem:[#allocation9 + $0xd8] sm:$0xff]  ;;  %681 = vmatpush3.bf16.msra.mxu0 %v680_v60 }
  0x7e   :  { %683 = vmatprep.subr.bf16.mxu0 %v682_v61  ;;  %v686_v3 = vpack.c.bf16 %v407_v1, %v406_v0 }
  0x80   :  { %645 = vmatpush1.bf16.msra.mxu1 %v644_v6  ;;  %v408_v6 = vld [vmem:[#allocation9 + $0xe0] sm:$0xff] }
  0x81   :  { %647 = vmatprep.subr.bf16.mxu1 %v646_v7  ;;  %v409_v7 = vld [vmem:[#allocation9 + $0xe8] sm:$0xff]  ;;  %685 = vmatpush3.bf16.msra.mxu0 %v684_v2 }
  0x82   :  { %687 = vmatprep.subr.bf16.mxu0 %v686_v3  ;;  %v690_v9 = vpack.c.bf16 %v409_v7, %v408_v6 }
  0x84   :  { %649 = vmatpush1.bf16.msra.mxu1 %v648_v12  ;;  %v152_v12 = vsub.s32 0, %v151_v11 }
  0x85   :  { %651 = vmatprep.subr.bf16.mxu1 %v650_v13  ;;  %689 = vmatpush3.bf16.msra.mxu0 %v688_v8  ;;  %v148_v13 = vld [vmem:[%s1009_s2] sm:$0x3] }
  0x86   :  { %691 = vmatprep.subr.bf16.mxu0 %v690_v9  ;;  %v153_v15 = vrot.slane %v148_v13, %v152_v12  ;;  %v157_v16 = vrot.slane %v148_v13, %v156_v14 }
  0x88   :  { %653 = vmatpush1.bf16.msra.mxu1 %v652_v18 }
  0x89   :  { %655 = vmatprep.subr.bf16.mxu1 %v654_v19 }
  0x8c   :  { %657 = vmatpush1.bf16.msra.mxu1 %v656_v24  ;;  %v692_v24 = vpack.c.bf16 %v393_v23, %v392_v22 }
  0x8d   :  { %659 = vmatprep.subr.bf16.mxu1 %v658_v25  ;;  %v410_v25 = vld [vmem:[#allocation9 + $0xf0] sm:$0xff] }
  0x8e   :  { %693 = vmatpush3.bf16.msra.mxu0 %v692_v24  ;;  %v694_v27 = vpack.c.bf16 %v411_v26, %v410_v25 }
  0x90   :  { %661 = vmatpush1.bf16.msra.mxu1 %v660_v28  ;;  %v394_v28 = vld [vmem:[#allocation9 + $0x70] sm:$0xff]  ;;  %695 = vmatprep.subr.bf16.mxu0 %v694_v27 }
  0x91   :  { %663 = vmatprep.subr.bf16.mxu1 %v662_v31  ;;  %v696_v30 = vpack.c.bf16 %v395_v29, %v394_v28  ;;  %v295_v31 = vld [vmem:[%s1011_s4] sm:$0x3] }
  0x92   :  { %v300_v32 = vrot.slane %v295_v31, %v152_v12  ;;  %v304_v33 = vrot.slane %v295_v31, %v156_v14 }
  0x93   :  { %697 = vmatpush3.bf16.msra.mxu0 %v696_v30 }
  0x94   :  { %665 = vmatpush1.bf16.msra.mxu1 %v664_v34 }
 0x141   :  { %v226_v17 = vpop.f32.mrb[0].mxu0 }
 0x142   :  { %v227_v18 = vadd.f32 %v226_v17, %v153_v15  ;;  %v228_v19 = vpop.f32.mrb[1].mxu0 }
 0x143   :  { %v229_v20 = vadd.f32 %v228_v19, %v157_v16 }
 0x145   :  { %v491_v21 = vcombine.low %v227_v18, %v229_v20  ;;  %371 = vmatprep.mubr.f32.mxu1 %v229_v20 }
 0x146   :  { %372 = vmatmul.mubr.f32.vlgmr.msra.gmra.mrb[0].mxu1 %v227_v18 }
 0x147   :  { %534 = vst.sshfl [vmem:[#allocation11] sm:$0x33 pattern:$0x76325410] %v491_v21 }
 0x219   :  { %v373_v34 = vpop.f32.mrb[0].mxu1 }
 0x21a   :  { %v374_v35 = vadd.f32 %v373_v34, %v300_v32  ;;  %v375_v36 = vpop.f32.mrb[1].mxu1 }
 0x21b   :  { %v376_v37 = vadd.f32 %v375_v36, %v304_v33 }
 0x21c   :  { %v378_v39 = vmax.f32 %v374_v35, 0.0 }
 0x21d   :  { %v379_v38 = vmax.f32 %v376_v37, 0.0 }
 0x21f   :  { %483 = vmatprep.mubr.f32.mxu0 %v379_v38 }
 0x220   :  { %484 = vmatmul.mubr.f32.vlgmr.msra.gmra.mrb[2].mxu0 %v378_v39 }
 0x221   :  { %808 = shalt.err (!%p805_p8)
}
 0x222   :  { %s809_s17 = scalar_lea.hbm %s1014_s7, 64 }
 0x223   :  { %p810_p9 = scmp.ne.s32.totalorder %s1014_s7, %s809_s17  ;;  %p813_p10 = scmp.lt.u32.totalorder %s809_s17, %s1014_s7 }
 0x225   :  { %p815_p11 = pnand %p813_p10, %p810_p9 }
 0x227   :  { %818 = shalt.err (!%p815_p11)
}
 0x228   :  { %511 = dma.vmem_to_hbm [thread:$0]  %s509_s11, 64, %s1014_s7, [#allocation5]   ;;  %v533_v41 = vld [vmem:[%s1013_s6] ss:$0 sm:$0xff] }
 0x229   :  { %s861_s25 = smov [#allocation12]  }
 0x22a   :  { %s518_s26 = sshll.u32 %s861_s25, 4  ;;  %s519_s26 = int_to_ptr.vmem [resolvable:$true] %s518_s26 }
 0x22b   :  { %s819_s27 = scalar_lea.vmem %s519_s26, 32  ;;  %p824_p13 = scmp.lt.s32.totalorder %s519_s26, %s519_s26 }
 0x22c   :  { %p820_p12 = scmp.ne.s32.totalorder %s519_s26, %s819_s27  ;;  %p825_p0 = scmp.lt.s32.totalorder %s819_s27, %s819_s27 }
 0x22e   :  { %p826_p1 = por %p825_p0, %p824_p13 }
 0x230   :  { %p827_p2 = pnand %p826_p1, %p820_p12 }
 0x2f3   :  { %v567_v40 = vpop.f32.mrb[2].mxu0 }
 0x2f4   :  { %v568_v42 = vpop.f32.mrb[3].mxu0 }
 0x2f5   :  { %v569_v43 = vadd.f32 %v568_v42, %v567_v40 }
 0x2f7   :  { %v486_v44 = vadd.f32 %v569_v43, %v533_v41 }
 0x2f9   :  { %501 = vst [vmem:[#allocation12] sm:$0x3] %v486_v44 }
 0x2fa   :  { %830 = shalt.err (!%p827_p2)
}
 0x2fb   :  { %s831_s30 = scalar_lea.hbm %s1015_s8, 32 }
 0x2fc   :  { %p832_p3 = scmp.ne.s32.totalorder %s1015_s8, %s831_s30  ;;  %p835_p4 = scmp.lt.u32.totalorder %s831_s30, %s1015_s8 }
 0x2fe   :  { %p837_p5 = pnand %p835_p4, %p832_p3 }
 0x300   :  { %840 = shalt.err (!%p837_p5)
}
 0x301   :  { %521 = dma.vmem_to_hbm [thread:$0]  %s519_s26, 32, %s1015_s8, [#allocation13]  }
 0x302   :  { %847 = dma.done.wait [#allocation5], 64  }
 0x303   :  { %848 = vsyncadd [#allocation5], 4294967232 }
 0x304   :  { %849 = dma.done.wait [#allocation13], 32  }
 0x305   :  { %850 = vsyncadd [#allocation13], 4294967264 }
 0x306   :  { %528 = vsyncpa [#allocation4], 1 }
 0x307   :  { %529 = vsyncpa [#allocation7], 1 }
 0x308   :  { %530 = vsyncpa [#allocation10], 1 }
 0x309   :  { %531 = vsyncpa [#allocation5], 1 }
 0x30a   :  { %532 = vsyncpa [#allocation13], 1 }

</bundles_post_ra>
